<compile_context>
chip_gen: v5e
topology: v5e:2x2
jax: 0.10.0
libtpu: 0.0.40
codegen_flags: <defaults>
</compile_context>

<pallas_src>
import math

import jax
import jax.numpy as jnp
from jax.experimental import pallas as pl
from jax.experimental.pallas import tpu as pltpu

_LANES = 128


def _round_up(a, b):
    return (a + b - 1) // b * b


def _row_align(itemsize):
    # Native sublane tile: 8 rows for 32-bit, 16 for 16-bit, 32 for 8-bit.
    if itemsize >= 4:
        return 8
    if itemsize == 2:
        return 16
    return 32


def _hw_budgets():
    """(block_bytes, vmem_limit_bytes) tuned per TPU generation."""
    try:
        info = pltpu.get_tpu_info()
        cap = int(getattr(info, "vmem_capacity_bytes", 128 * 1024 * 1024))
    except Exception:  # pragma: no cover - conservative fallback
        cap = 128 * 1024 * 1024
    if cap <= 80 * 1024 * 1024:          # v7x-class: 64 MiB per TensorCore
        return 3 * 1024 * 1024, 36 * 1024 * 1024
    return 4 * 1024 * 1024, 64 * 1024 * 1024


def _cost(n_elems, itemsize):
    # Advisory hint so XLA schedules this mem-bound custom call sensibly.
    return pl.CostEstimate(flops=4 * n_elems,
                           transcendentals=2 * n_elems,
                           bytes_accessed=2 * n_elems * itemsize)


def _row_tile(n_rows, row_bytes_f32, block_bytes, align):
    """Row-tile size: fill ~block_bytes of f32 working set, multiple of
    `align` rows, but small enough that the grid has >= ~4 steps."""
    tr = max((block_bytes // row_bytes_f32) // align * align, align)
    tr = min(tr, max(align, _round_up(pl.cdiv(n_rows, 4), align)))
    return tr


# --------------------------------------------------------------------------
# Kernels
# --------------------------------------------------------------------------
def _rowwise_kernel(x_ref, o_ref):
    """One block = (TR, D); reduce over lanes, write log(x) - log(sum)."""
    x = x_ref[...].astype(jnp.float32)
    s = jnp.sum(x, axis=-1, keepdims=True)
    o_ref[...] = (jnp.log(x) - jnp.log(s)).astype(o_ref.dtype)


def _packed_kernel(x_ref, m_ref, o_ref):
    """Lane-packed block = (TR, L) with L = G*d; each row packs G logical rows.

    Per-group sums are computed with a block-diagonal ones matrix on the MXU.
    x is split into two exact-ish bf16 components (hi + lo reproduces x up to
    a relative 2^-18) so two bf16 matmuls accumulated in f32 give a row sum
    well inside f32-level accuracy for a <= 128-term sum.
    """
    x = x_ref[...].astype(jnp.float32)
    m = m_ref[...]                                  # (L, L) bf16, exact 0/1
    hi = x.astype(jnp.bfloat16)
    lo = (x - hi.astype(jnp.float32)).astype(jnp.bfloat16)   # exact residual cast
    s = jnp.dot(hi, m, preferred_element_type=jnp.float32)
    s = s + jnp.dot(lo, m, preferred_element_type=jnp.float32)
    o_ref[...] = (jnp.log(x) - jnp.log(s)).astype(o_ref.dtype)


def _make_rowsum_kernel(d, td):
    """grid = (row_tiles, d_tiles); D axis last + 'arbitrary': accumulate sums.
    Masks the partial last D block in-kernel so no zero-pad copy is needed."""
    need_mask = (d % td) != 0

    def kernel(x_ref, s_ref):
        @pl.when(pl.program_id(1) == 0)
        def _():
            s_ref[...] = jnp.zeros_like(s_ref)

        x = x_ref[...].astype(jnp.float32)
        if need_mask:
            col = pl.program_id(1) * td + jax.lax.broadcasted_iota(
                jnp.int32, x.shape, 1)
            x = jnp.where(col < d, x, 0.0)
        s_ref[...] += jnp.sum(x, axis=-1, keepdims=True)

    return kernel


def _finalize_kernel(x_ref, s_ref, o_ref):
    x = x_ref[...].astype(jnp.float32)
    o_ref[...] = (jnp.log(x) - jnp.log(s_ref[...])).astype(o_ref.dtype)


# --------------------------------------------------------------------------
# Wrapper paths
# --------------------------------------------------------------------------
def _forward_rowwise(x2d, rows, d, block_bytes, vmem_limit):
    itemsize = x2d.dtype.itemsize
    align = _row_align(itemsize)
    tr = _row_tile(rows, d * 4, block_bytes, align)
    grid = (pl.cdiv(rows, tr),)
    return pl.pallas_call(
        _rowwise_kernel,
        out_shape=jax.ShapeDtypeStruct((rows, d), x2d.dtype),
        grid_spec=pltpu.PrefetchScalarGridSpec(
            num_scalar_prefetch=0,
            grid=grid,
            in_specs=[pl.BlockSpec((tr, d), lambda i: (i, 0))],
            out_specs=pl.BlockSpec((tr, d), lambda i: (i, 0)),
        ),
        compiler_params=pltpu.CompilerParams(
            dimension_semantics=("parallel",),
            vmem_limit_bytes=vmem_limit,
        ),
        cost_estimate=_cost(rows * d, itemsize),
    )(x2d)


def _forward_packed(x2d, rows, d, block_bytes, vmem_limit):
    g = _LANES // d                      # logical rows per packed row
    L = g * d                            # packed last dim (65..128)
    rows_g = _round_up(rows, g)
    if rows_g != rows:                   # single <= g-1 row pad (only copy needed)
        x2d = jnp.pad(x2d, ((0, rows_g - rows), (0, 0)), constant_values=1.0)
    packed = rows_g // g
    xp = x2d.reshape(packed, L)          # contiguous regrouping: free (bitcast)

    itemsize = x2d.dtype.itemsize
    align = _row_align(itemsize)
    tr = _row_tile(packed, L * 4, block_bytes, align)
    grid = (pl.cdiv(packed, tr),)

    # Block-diagonal "ones" matrix selecting each lane's d-lane group.
    grp = jnp.arange(L, dtype=jnp.int32) // d
    mb = (grp[:, None] == grp[None, :]).astype(jnp.bfloat16)

    out = pl.pallas_call(
        _packed_kernel,
        out_shape=jax.ShapeDtypeStruct((packed, L), x2d.dtype),
        grid_spec=pltpu.PrefetchScalarGridSpec(
            num_scalar_prefetch=0,
            grid=grid,
            in_specs=[pl.BlockSpec((tr, L), lambda i: (i, 0)),
                      pl.BlockSpec((L, L), lambda i: (0, 0))],
            out_specs=pl.BlockSpec((tr, L), lambda i: (i, 0)),
        ),
        compiler_params=pltpu.CompilerParams(
            dimension_semantics=("parallel",),
            vmem_limit_bytes=vmem_limit,
        ),
        cost_estimate=_cost(packed * L, itemsize),
    )(xp, mb)

    out = out.reshape(rows_g, d)
    if rows_g != rows:
        out = out[:rows]
    return out


def _forward_two_pass(x2d, rows, d, block_bytes, vmem_limit):
    # D too wide for a single (align, D) block: tile the reduction axis.
    itemsize = x2d.dtype.itemsize
    align = _row_align(itemsize)
    td = max((block_bytes // (align * 4)) // _LANES * _LANES, _LANES)
    td = min(td, _round_up(d, _LANES))
    tr = _row_tile(rows, td * 4, block_bytes, align)
    grid = (pl.cdiv(rows, tr), pl.cdiv(d, td))

    sums = pl.pallas_call(
        _make_rowsum_kernel(d, td),
        out_shape=jax.ShapeDtypeStruct((rows, 1), jnp.float32),
        grid_spec=pltpu.PrefetchScalarGridSpec(
            num_scalar_prefetch=0,
            grid=grid,
            in_specs=[pl.BlockSpec((tr, td), lambda i, j: (i, j))],
            out_specs=pl.BlockSpec((tr, 1), lambda i, j: (i, 0)),
        ),
        compiler_params=pltpu.CompilerParams(
            dimension_semantics=("parallel", "arbitrary"),
            vmem_limit_bytes=vmem_limit,
        ),
        cost_estimate=_cost(rows * d, itemsize),
    )(x2d)

    return pl.pallas_call(
        _finalize_kernel,
        out_shape=jax.ShapeDtypeStruct((rows, d), x2d.dtype),
        grid_spec=pltpu.PrefetchScalarGridSpec(
            num_scalar_prefetch=0,
            grid=grid,
            in_specs=[pl.BlockSpec((tr, td), lambda i, j: (i, j)),
                      pl.BlockSpec((tr, 1), lambda i, j: (i, 0))],
            out_specs=pl.BlockSpec((tr, td), lambda i, j: (i, j)),
        ),
        compiler_params=pltpu.CompilerParams(
            dimension_semantics=("parallel", "parallel"),
            vmem_limit_bytes=vmem_limit,
        ),
        cost_estimate=_cost(rows * d, itemsize),
    )(x2d, sums)


def dummy_generator_forward(x: jax.Array, *,
                            block_bytes: int | None = None,
                            vmem_limit_bytes: int | None = None,
                            single_pass_cap_bytes: int | None = None) -> jax.Array:
    """JAX/Pallas equivalent of DummyGenerator.forward (any rank >= 1)."""
    orig_shape = x.shape
    d = int(orig_shape[-1])
    rows = int(math.prod(orig_shape[:-1]))
    x2d = x.reshape(rows, d)

    bb_default, vlim_default = _hw_budgets()
    bb = block_bytes or bb_default
    vlim = vmem_limit_bytes or vlim_default
    # Prefer single-pass whenever a single (8, D) f32 block fits comfortably.
    cap = single_pass_cap_bytes or max(bb, vlim // 8)

    if d <= _LANES // 2:                          # d <= 64: lane-dense packing
        out2d = _forward_packed(x2d, rows, d, bb, vlim)
    elif 8 * d * 4 <= cap:                        # single-pass row-wise
        out2d = _forward_rowwise(x2d, rows, d, bb, vlim)
    else:                                         # very wide D: two passes
        out2d = _forward_two_pass(x2d, rows, d, bb, vlim)
    return out2d.reshape(orig_shape)


# --------------------------------------------------------------------------
# Self-test
# --------------------------------------------------------------------------
if __name__ == "__main__":
    key = jax.random.PRNGKey(0)
    k0, k1, k2, k3 = jax.random.split(key, 4)

    def reference(a):
        return jnp.log(a / jnp.sum(a, axis=-1, keepdims=True))

    # 1) Primary case: NCHW-style input, D=16 -> lane-packed path (G=8).
    x = jax.random.uniform(k0, (2, 4, 16, 16), dtype=jnp.float32,
                           minval=0.1, maxval=1.0)
    out = jax.block_until_ready(dummy_generator_forward(x))
    assert out.shape == x.shape and out.dtype == x.dtype
    assert jnp.allclose(out, reference(x), atol=2e-5, rtol=2e-5)

    # 2) d=40 (does not divide 128) + ragged rows -> generalized packed path
    #    (G=3, L=120) with a single <=2-row pad.
    x_r = jax.random.uniform(k1, (7, 5, 40), dtype=jnp.float32,
                             minval=0.1, maxval=1.0)
    out_r = jax.block_until_ready(dummy_generator_forward(x_r))
    assert jnp.allclose(out_r, reference(x_r), atol=2e-5, rtol=2e-5)

    # 3) Medium D, ragged row count -> row-wise path with a partial last block.
    x_m = jax.random.uniform(k2, (9, 200), dtype=jnp.float32,
                             minval=0.1, maxval=1.0)
    out_m = jax.block_until_ready(dummy_generator_forward(x_m))
    assert jnp.allclose(out_m, reference(x_m), atol=2e-5, rtol=2e-5)

    # 4) Force the D-tiled two-pass path (partial D block exercises the
    #    in-kernel column mask) with a tiny budget.
    x_b = jax.random.uniform(k3, (16, 1000), dtype=jnp.float32,
                             minval=0.1, maxval=1.0)
    out_b = jax.block_until_ready(
        dummy_generator_forward(x_b, block_bytes=16 * 1024,
                                single_pass_cap_bytes=16 * 1024))
    assert jnp.allclose(out_b, reference(x_b), atol=2e-5, rtol=2e-5)

    print("KERNEL_OK")
</pallas_src>

<mosaic_0001>
module attributes {stable_mosaic.version = 11 : i64} {
  func.func @_packed_kernel(%arg0: i32, %arg1: memref<8x128xf32, #tpu.memory_space<vmem>>, %arg2: memref<128x128xbf16, #tpu.memory_space<vmem>>, %arg3: memref<8x128xf32, #tpu.memory_space<vmem>>) attributes {dimension_semantics = [#tpu.dimension_semantics<parallel>], iteration_bounds = array<i64: 2>, scalar_prefetch = 0 : i64, scratch_operands = 0 : i64, tpu.core_type = #tpu.core_type<tc>, window_params = [{transform_indices = @transform_0, window_bounds = array<i64: 8, 128>}, {pipeline_mode = #tpu.pipeline_mode<synchronous>, transform_indices = @transform_1, window_bounds = array<i64: 128, 128>}, {transform_indices = @transform_2, window_bounds = array<i64: 8, 128>}]} {
    %c0 = arith.constant 0 : index
    %c0_0 = arith.constant 0 : index
    %0 = vector.load %arg1[%c0, %c0_0] : memref<8x128xf32, #tpu.memory_space<vmem>>, vector<8x128xf32>
    %c0_1 = arith.constant 0 : index
    %c0_2 = arith.constant 0 : index
    %1 = vector.load %arg2[%c0_1, %c0_2] : memref<128x128xbf16, #tpu.memory_space<vmem>>, vector<128x128xbf16>
    %2 = arith.truncf %0 : vector<8x128xf32> to vector<8x128xbf16>
    %3 = arith.extf %2 : vector<8x128xbf16> to vector<8x128xf32>
    %4 = arith.subf %0, %3 : vector<8x128xf32>
    %5 = arith.truncf %4 : vector<8x128xf32> to vector<8x128xbf16>
    %cst = arith.constant dense<0.000000e+00> : vector<8x128xf32>
    %6 = tpu.matmul %2, %1, %cst {dimension_numbers = #tpu.dot_dimension_numbers<[1], [0], [0], [1], [0, 0, 1, 1], [], []>} : vector<8x128xbf16>, vector<128x128xbf16>, vector<8x128xf32> -> vector<8x128xf32>
    %cst_3 = arith.constant dense<0.000000e+00> : vector<8x128xf32>
    %7 = tpu.matmul %5, %1, %cst_3 {dimension_numbers = #tpu.dot_dimension_numbers<[1], [0], [0], [1], [0, 0, 1, 1], [], []>} : vector<8x128xbf16>, vector<128x128xbf16>, vector<8x128xf32> -> vector<8x128xf32>
    %8 = arith.addf %6, %7 : vector<8x128xf32>
    %9 = math.log %0 : vector<8x128xf32>
    %10 = math.log %8 : vector<8x128xf32>
    %11 = arith.subf %9, %10 : vector<8x128xf32>
    %c0_4 = arith.constant 0 : index
    %c0_5 = arith.constant 0 : index
    %12 = vector.load %arg3[%c0_4, %c0_5] : memref<8x128xf32, #tpu.memory_space<vmem>>, vector<8x128xf32>
    tpu.vector_store %arg3[%c0_4, %c0_5], %11 {strides = array<i32>} : memref<8x128xf32, #tpu.memory_space<vmem>>, vector<8x128xf32>,
    return
  }
  func.func @transform_0(%arg0: i32) -> (i32, i32) {
    %c0_i32 = arith.constant 0 : i32
    %c0_i32_0 = arith.constant 0 : i32
    return %arg0, %c0_i32 : i32, i32
  }
  func.func @transform_1(%arg0: i32) -> (i32, i32) {
    %c0_i32 = arith.constant 0 : i32
    %c0_i32_0 = arith.constant 0 : i32
    %c0_i32_1 = arith.constant 0 : i32
    return %c0_i32, %c0_i32_0 : i32, i32
  }
  func.func @transform_2(%arg0: i32) -> (i32, i32) {
    %c0_i32 = arith.constant 0 : i32
    %c0_i32_0 = arith.constant 0 : i32
    return %arg0, %c0_i32 : i32, i32
  }
}

</mosaic_0001>

<bundles_post_ra>
// kernel: tpu_custom_call.1
= control target key start
LH: loop header
LB: loop body
LE: loop exit
PB: predicated region body
PF: predicated region fallthrough
CT: control target
= control target key end

     0   :  { %7 = vsyncpa [#allocation3], 0  ;;  %s782_s0 = inlined_call_operand.hbm [shape: f32[16,128], index: 0, kind: input, shape index: {}]   ;;  %s783_s1 = inlined_call_operand.hbm [shape: bf16[128,128], index: 1, kind: input, shape index: {}]   ;;  %s784_s2 = inlined_call_operand.hbm [shape: f32[16,128], index: 2, kind: output, shape index: {}]  }
   0x1   :  { %9 = vsyncpa [#allocation3 + $0x1], 0 }
   0x2   :  { %10 = vsyncpa [#allocation6], 0 }
   0x3   :  { %11 = vsyncpa [#allocation4], 0 }
   0x4   :  { %13 = vsyncpa [#allocation4 + $0x1], 0  ;;  %s642_s9 = smov 0   ;;  %s644_s10 = smov 0  }
   0x5   :  { %s646_s11 = smov 0   ;;  %s648_s12 = smov 0  }
   0x6 LB: > { %s108_s15 = sshll.u32 %s783_s1, 4  ;;  %s666_s16 = sadd.s32 4294967295, %s622_s12   ;;  %s622_s12 = sphi %s648_s12, %s794_s12   ;;  %s618_s11 = sphi %s646_s11, %s793_s11   ;;  %s614_s10 = sphi %s644_s10, %s792_s10   ;;  %s610_s9 = sphi %s642_s9, %s791_s9   ;;  %s109_s15 = int_to_ptr.hbm [resolvable:$true] %s108_s15 }
   0x7   : > { %p376_p0 = scmp.ge.s32.totalorder %s622_s12, 1  ;;  %p40_p1 = scmp.eq.s32.totalorder %s666_s16, 0 }
   0x8   : > { %p97_p2 = scmp.lt.s32.totalorder %s622_s12, 3  ;;  %s624_s18 = smov [#allocation5]  }
   0x9   : > { %s110_s19 = sshll.u32 %s624_s18, 4  ;;  %s625_s20 = smov 64   ;;  %s111_s19 = int_to_ptr.vmem [resolvable:$true] %s110_s19 }
   0xa   : > { %p671_p3 = pnand %p376_p0, %p97_p2  ;;  %s626_s21 = smov 4  }
   0xb   : > { %s375_s22 = sadd.s32 4294967294, %s622_s12   ;;  %s682_s23 = sadd.s32 1, %s622_s12  }
   0xc   : > { %p437_p4 = pneg %p671_p3  ;;  %s26_s24 = sadd.s32 1, %s618_s11 }
   0xd   : > { %s23_s25 = ssub.s32 %s622_s12, %s682_s23  ;;  %p33_p7 = scmp.ne.s32.totalorder %s618_s11, %s614_s10 }
   0xe   : > { %p438_p6 = pnand %p437_p4, %p40_p1  ;;  %p24_p8 = scmp.eq.s32.totalorder %s23_s25, 0 }
   0xf   : > { %p34_p9 = scmp.eq.s32.totalorder %s622_s12, 0  ;;  %p39_p10 = scmp.ne.s32.totalorder %s614_s10, %s610_s9 }
  0x10   : > { %440 = dma.hbm_to_vmem [thread:$0]  (!%p438_p6), %s109_s15, 1024, %s111_s19, [#allocation6], %s625_s20, %s625_s20, %s626_s21  }
  0x11   : > { %p84_p11 = scmp.eq.s32.totalorder %s666_s16, 1  ;;  %p698_p12 = por %p40_p1, %p39_p10 }
  0x12   : > { %s694_s26 = scalar_select %p24_p8, %s618_s11, %s26_s24  }
  0x13   : > { %p702_p13 = por %p84_p11, %p33_p7  ;;  %p90_p0 = scmp.eq.s32.totalorder %s375_s22, 1 }
  0x14   : > { %p35_p2 = por %p34_p9, %p33_p7  ;;  %s124_s29 = sand.u32 1, %s618_s11  }
  0x15   : > { %p707_p4 = por %p90_p0, %p39_p10  ;;  %p450_p6 = scmp.lt.s32.totalorder %s622_s12, 2 }
  0x16   : > { %s379_s3 = sshll.u32 %s124_s29, 3  ;;  %s380_s4 = sshll.u32 %s622_s12, 3 }
  0x17   : > { %s132_s7 = scalar_lea.hbm %s782_s0, %s380_s4  ;;  %s128_s13 = scalar_lea.vmem [#allocation2], %s379_s3 }
  0x18   : > { %s134_s8 = sshll.u32 %s132_s7, 4  ;;  %s136_s14 = sshll.u32 %s128_s13, 4  ;;  %s135_s8 = int_to_ptr.hbm [resolvable:$true] %s134_s8  ;;  %s137_s14 = int_to_ptr.vmem [resolvable:$true] %s136_s14 }
  0x19   : > { %p716_p8 = pnand %p450_p6, %p35_p2  ;;  %s125_s18 = scalar_lea.sflag [#allocation3], %s124_s29 }
  0x1a   : > { %s522_s19 = sshra.s32 %s135_s8, 4  ;;  %s529_s24 = scalar_lea.hbm %s782_s0, 16  ;;  %s523_s19 = int_to_ptr.hbm [resolvable:$true] %s522_s19 }
  0x1b   : > { %s524_s20 = scalar_lea.hbm %s523_s19, 8  ;;  %p526_p9 = pneg %p716_p8 }
  0x1c   : > { %p525_p7 = scmp.ne.s32.totalorder %s523_s19, %s524_s20  ;;  %p530_p0 = scmp.lt.s32.totalorder %s523_s19, %s782_s0 }
  0x1d   : > { %p531_p2 = scmp.lt.s32.totalorder %s529_s24, %s524_s20 }
  0x1e   : > { %p527_p10 = pnand %p526_p9, %p525_p7 }
  0x1f   : > { %p532_p6 = por %p531_p2, %p530_p0 }
  0x20   : > { %p528_p11 = pneg %p527_p10 }
  0x22   : > { %p533_p5 = pnand %p532_p6, %p528_p11 }
  0x24   : > { %536 = shalt.err (!%p533_p5)
}
  0x25   : > { %444 = dma.hbm_to_vmem [thread:$0]  (!%p716_p8), %s135_s8, 128, %s137_s14, %s125_s18  }
  0x26   : > { %145 = sbr.rel (%p671_p3) target bundleno = 220 (0xdc), region = 28  ;;  %s733_s29 = sand.u32 (!%p671_p3), 1, %s614_s10  }
  0x27   : > { %s382_s4 = sshll.u32 (!%p671_p3), %s733_s29, 3  ;;  %s148_s5 = scalar_lea.sflag (!%p671_p3), [#allocation3], %s733_s29 }
  0x28   : > { %s151_s6 = scalar_lea.vmem (!%p671_p3), [#allocation2], %s382_s4 }
  0x2b   : > { %597 = dma.done.wait (%p698_p12), %s148_s5, 128  }
  0x2c   : > { %599 = vsyncadd (%p698_p12), %s148_s5, 4294967168 }
  0x2d   : > { %601 = dma.done.wait (%p40_p1), [#allocation6], 1024  }
  0x2e   : > { %603 = vsyncadd (%p40_p1), [#allocation6], 4294966272  ;;  %v428_v0 = vld [vmem:[#allocation5 + $0x38] sm:$0xff]  ;;  %v427_v1 = vld [vmem:[#allocation5 + $0x30] sm:$0xff]  ;;  %s418_s17 = sshll.u32 %s666_s16, 3  ;;  %s177_s13 = scalar_lea.vmem [#allocation7], %s382_s4 }
  0x2f   : > { %247 = vmatpush.bf16.msra.mxu0 %v428_v0  ;;  %260 = vmatpush.bf16.msra.mxu1 %v428_v0  ;;  %v426_v2 = vld [vmem:[#allocation5 + $0x28] sm:$0xff]  ;;  %v425_v3 = vld [vmem:[#allocation5 + $0x20] sm:$0xff]  ;;  %v424_v4 = vld [vmem:[#allocation5 + $0x18] sm:$0xff]  ;;  %s290_s8 = scalar_lea.hbm %s784_s2, %s418_s17  ;;  %s292_s14 = sshll.u32 %s177_s13, 4  ;;  %s293_s14 = int_to_ptr.vmem [resolvable:$true] %s292_s14 }
  0x30   : > { %v178_v5 = vld [vmem:[%s151_s6] sm:$0xff]  ;;  %v422_v9 = vld [vmem:[#allocation5 + $0x8] sm:$0xff]  ;;  %v421_v11 = vld [vmem:[#allocation5] sm:$0xff]  ;;  %s294_s15 = sshll.u32 %s290_s8, 4  ;;  %s280_s16 = scalar_lea.sflag [#allocation4], %s733_s29  ;;  %s295_s15 = int_to_ptr.hbm [resolvable:$true] %s294_s15 }
  0x31   : > { %v195_v6 = vpack.c.bf16 %v178_v5, %v178_v5  ;;  %v423_v7 = vld [vmem:[#allocation5 + $0x10] sm:$0xff]  ;;  %488 = vlog2.f32 %v178_v5  ;;  %s566_s18 = sshra.s32 %s295_s15, 4  ;;  %s572_s22 = scalar_lea.hbm %s784_s2, 16  ;;  %s567_s18 = int_to_ptr.hbm [resolvable:$true] %s566_s18 }
  0x32   : > { %s568_s19 = scalar_lea.hbm %s567_s18, 8  ;;  %p573_p12 = scmp.lt.s32.totalorder %s567_s18, %s784_s2 }
  0x33   : > { %248 = vmatpush.bf16.msra.mxu0 %v427_v1  ;;  %261 = vmatpush.bf16.msra.mxu1 %v427_v1  ;;  %v196_v8 = vunpack.c.l.bf16 %v195_v6  ;;  %p569_p1 = scmp.ne.s32.totalorder %s567_s18, %s568_s19  ;;  %p574_p8 = scmp.lt.s32.totalorder %s572_s22, %s568_s19 }
  0x35   : > { %v197_v10 = vsub.f32 %v178_v5, %v196_v8  ;;  %p570_p3 = pnand %p569_p1, %p702_p13  ;;  %p575_p7 = por %p574_p8, %p573_p12 }
  0x37   : > { %249 = vmatpush.bf16.msra.mxu0 %v426_v2  ;;  %262 = vmatpush.bf16.msra.mxu1 %v426_v2  ;;  %v198_v12 = vpack.c.bf16 %v197_v10, %v197_v10  ;;  %v489_v16 = vpop.eup %488  ;;  %p571_p5 = pneg %p570_p3 }
  0x38   : > { %v274_v17 = vmul.f32 0.6931472, %v489_v16 }
  0x39   : > { %p576_p9 = pnand %p575_p7, %p571_p5 }
  0x3b   : > { %250 = vmatpush.bf16.msra.mxu0 %v425_v3  ;;  %263 = vmatpush.bf16.msra.mxu1 %v425_v3 }
  0x3f   : > { %251 = vmatpush.bf16.msra.mxu0 %v424_v4  ;;  %264 = vmatpush.bf16.msra.mxu1 %v424_v4 }
  0x43   : > { %252 = vmatpush.bf16.msra.mxu0 %v423_v7  ;;  %265 = vmatpush.bf16.msra.mxu1 %v423_v7 }
  0x47   : > { %253 = vmatpush.bf16.msra.mxu0 %v422_v9  ;;  %266 = vmatpush.bf16.msra.mxu1 %v422_v9 }
  0x4b   : > { %254 = vmatpush.bf16.msra.mxu0 %v421_v11  ;;  %267 = vmatpush.bf16.msra.mxu1 %v421_v11 }
  0x4e   : > { %255 = vmatmul.bf16.vlgmr.msra.gmra.mxu0 %v198_v12  ;;  %268 = vmatmul.bf16.vlgmr.msra.gmra.mxu1 %v195_v6 }
  0xcb   : > { %v256_v13 = vpop.f32.mrf.mxu0  ;;  %v269_v14 = vpop.f32.mrf.mxu1 }
  0xcc   : > { %v270_v15 = vadd.f32 %v269_v14, %v256_v13 }
  0xce   : > { %490 = vlog2.f32 %v270_v15 }
  0xd3   : > { %v258_v18 = vpop.f32.mrf.mxu0  ;;  %v271_v19 = vpop.f32.mrf.mxu1 }
  0xd4   : > { %v491_v20 = vpop.eup %490 }
  0xd5   : > { %v276_v21 = vmul.f32 0.6931472, %v491_v20 }
  0xd7   : > { %v277_v22 = vsub.f32 %v274_v17, %v276_v21 }
  0xd9   : > { %278 = vst [vmem:[%s177_s13] sm:$0xff] %v277_v22 }
  0xda   : > { %579 = shalt.err (!%p576_p9)
}
  0xdb   : > { %435 = dma.vmem_to_hbm [thread:$0]  (%p702_p13), %s293_s14, 128, %s295_s15, %s280_s16  }
  0xdc PF: > { %s306_s3 = sand.u32 1, %s610_s9   ;;  %p790_p10 = scmp.ge.s32.totalorder %s622_s12, 2 }
  0xdd   : > { %s307_s29 = scalar_lea.sflag [#allocation4], %s306_s3 }
  0xde   : > { %p446_p11 = pnand %p790_p10, %p707_p4 }
  0xe0   : > { %p447_p0 = pneg %p446_p11 }
  0xe2   : > { %605 = dma.done.wait (%p447_p0), %s307_s29, 128  }
  0xe3   : > { %607 = vsyncadd (%p447_p0), %s307_s29, 4294967168  ;;  %p16_p2 = scmp.ge.s32.totalorder %s682_s23, 4   ;;  %s791_s9 = smov %s614_s10 }
  0xe4   : > { %s792_s10 = smov %s618_s11  ;;  %s793_s11 = smov %s694_s26 }
  0xe5   : > { %s794_s12 = smov %s682_s23  ;;  %18 = sbr.rel (!%p16_p2) target bundleno = 6 (0x6), region = 77 }
  0xea   :  { %313 = vsyncpa [#allocation3], 1 }
  0xeb   :  { %315 = vsyncpa [#allocation3 + $0x1], 1 }
  0xec   :  { %316 = vsyncpa [#allocation6], 1 }
  0xed   :  { %317 = vsyncpa [#allocation4], 1 }
  0xee   :  { %319 = vsyncpa [#allocation4 + $0x1], 1 }

</bundles_post_ra>
